<compile_context>
chip_gen: v6e
topology: v6e:2x2x1
jax: 0.10.0
libtpu: 0.0.40
codegen_flags: <defaults>
</compile_context>

<pallas_src>
import functools

import jax
import jax.numpy as jnp
from jax.experimental import pallas as pl
from jax.experimental.pallas import tpu as pltpu

HIDDEN = 128  # hidden width of the gate MLP (fixed by the PyTorch module)


def gate_kernel(x_ref, w1_ref, b1_ref, w2_ref, b2_ref, o_ref, *,
                mxu_dtype=None, tanh_dtype=None):
    x = x_ref[...]
    w1 = w1_ref[...]
    if mxu_dtype is not None:
        # In-kernel cast: feeds the MXU bf16 with zero extra HBM traffic
        # (wrapper-side astype would add a whole extra HBM pass).
        x = x.astype(mxu_dtype)
        w1 = w1.astype(mxu_dtype)

    # First linear on the MXU: [TM, E] @ [E, 128] -> [TM, 128], f32 accumulation.
    h = jnp.dot(x, w1, preferred_element_type=jnp.float32)
    h = h + b1_ref[...].astype(jnp.float32)

    # tanh on the EUP. Optionally bf16 (v6e/v7x, small E) to double the EUP rate;
    # accumulation for the second layer stays f32 either way.
    if tanh_dtype is not None:
        h = jnp.tanh(h.astype(tanh_dtype)).astype(jnp.float32)
    else:
        h = jnp.tanh(h)

    # Second linear as VPU mul + lane reduce (avoid a degenerate N=1 MXU matmul):
    #   [TM, 128] * [1, 128] -> sum over lanes -> [TM, 1]
    w2_row = w2_ref[...].astype(jnp.float32)
    out = jnp.sum(h * w2_row, axis=-1, keepdims=True)

    # b2 is a scalar living in SMEM.
    out = out + b2_ref[0, 0]
    o_ref[...] = out.astype(o_ref.dtype)
    # TODO(synk): if the store path ever dominates (tiny E), emit a lane-dense [1, tm]
    # output row per tile instead of the (tm, 1) column to avoid masked vst stores.


def _round_up(x, m):
    return -(-x // m) * m


def _pick_block_rows(B, E, x_itemsize, w_itemsize, vmem_limit_bytes):
    """Largest batch tile that fits the *full* VMEM footprint under vmem_limit_bytes:
      resident (single-buffered) W1/b1/w2 + double-buffered x tile + f32 intermediates
      + double-buffered output tile, with headroom for compiler scratch."""
    H = HIDDEN
    # Resident operands (single-buffered via pl.Buffered(1)).
    resident = E * H * w_itemsize + 2 * H * max(w_itemsize, 4)
    headroom = 2 * 1024 * 1024
    budget = max(vmem_limit_bytes - resident - headroom, 1 * 1024 * 1024)

    # Per batch row, per grid step:
    #   x tile (double buffered):      2 * E * x_itemsize
    #   h / product intermediates f32: ~2 * H * 4
    #   out tile (double buffered):    2 * 4
    per_row = 2 * E * x_itemsize + 2 * H * 4 + 2 * 4

    # Aim for a few MiB of x per step; allow up to 8192 rows when E is small so the
    # ~0.35us per-grid-step overhead stays negligible.
    rows_for_target = (4 * 1024 * 1024) // max(E * x_itemsize, 1)
    row_cap = min(8192, max(1024, rows_for_target))

    tm = min(budget // per_row, row_cap)
    tm = max(8, (tm // 8) * 8)              # sublane alignment
    tm = min(tm, _round_up(B, 8))           # never tile larger than the batch

    # v7x megacore: ensure the "parallel" batch axis has >= 2 steps when B allows,
    # so both TensorCores get work (no effect on v5e/v6e with 1 TC).
    if B >= 16 and _round_up(B, 8) <= tm:
        tm = max(8, _round_up(-(-B // 2), 8))
    return tm


def gate_forward(embedding, w1, b1, w2, b2, *, block_rows=None,
                 mxu_dtype=None, tanh_dtype=None,
                 vmem_limit_bytes=32 * 1024 * 1024):
    """embedding: [B, E] -> [B, 1].  w1: [E, 128], b1: [1, 128], w2: [128, 1], b2: [1, 1].

    mxu_dtype=jnp.bfloat16 feeds the E x 128 GEMM in bf16 (f32 accumulation); this is
    the recommended production setting on all of v5e/v6e/v7x (changes matmul numerics).
    tanh_dtype=jnp.bfloat16 halves EUP cost for small-E shapes on v6e/v7x (keep None on v5e).
    """
    B, E = embedding.shape
    H = w1.shape[1]
    out_dtype = embedding.dtype

    # Second-layer weight as a lane-dense row for the VPU reduce; b2 as SMEM scalar.
    w2_row = w2.reshape(1, H)
    b2_s = b2.reshape(1, 1).astype(jnp.float32)

    if block_rows is not None:
        tm = max(8, (int(block_rows) // 8) * 8)    # enforce sublane multiple
        tm = min(tm, _round_up(B, 8))
    else:
        tm = _pick_block_rows(B, E,
                              jnp.dtype(embedding.dtype).itemsize,
                              jnp.dtype(w1.dtype).itemsize,
                              vmem_limit_bytes)

    grid = (pl.cdiv(B, tm),)   # ragged last block: output writes are masked by Pallas

    kernel = functools.partial(gate_kernel, mxu_dtype=mxu_dtype, tanh_dtype=tanh_dtype)

    out = pl.pallas_call(
        kernel,
        out_shape=jax.ShapeDtypeStruct((B, 1), out_dtype),
        grid_spec=pltpu.PrefetchScalarGridSpec(
            num_scalar_prefetch=0,
            grid=grid,
            in_specs=[
                # x tile, pipelined (double-buffered) over the batch.
                pl.BlockSpec((tm, E), lambda i: (i, 0)),
                # Resident operands: constant index map -> single buffer is enough.
                pl.BlockSpec((E, H), lambda i: (0, 0),
                             pipeline_mode=pl.Buffered(buffer_count=1)),
                pl.BlockSpec((1, H), lambda i: (0, 0),
                             pipeline_mode=pl.Buffered(buffer_count=1)),
                pl.BlockSpec((1, H), lambda i: (0, 0),
                             pipeline_mode=pl.Buffered(buffer_count=1)),
                # b2 scalar in SMEM (no wasted (8,128) VMEM tile / DMA stream).
                pl.BlockSpec(memory_space=pltpu.MemorySpace.SMEM),
            ],
            out_specs=pl.BlockSpec((tm, 1), lambda i: (i, 0)),
        ),
        compiler_params=pltpu.CompilerParams(
            dimension_semantics=("parallel",),
            vmem_limit_bytes=vmem_limit_bytes,
        ),
    )(embedding, w1, b1, w2_row, b2_s)
    return out
    # TODO(synk): if E grows to tens of thousands, add a K-tiling ("arbitrary") grid
    # axis over E with an f32 VMEM accumulator so W1 + the x tile fit v7x's 64 MiB VMEM.


def init_params(key, embd_dim, hidden=HIDDEN, dtype=jnp.float32):
    """Deterministic PyTorch-style (Kaiming-uniform-ish) init.
    Weights stored as [in, out] (transposed vs torch's [out, in])."""
    k1, k2, k3, k4 = jax.random.split(key, 4)
    bound1 = 1.0 / jnp.sqrt(embd_dim)
    bound2 = 1.0 / jnp.sqrt(hidden)
    w1 = jax.random.uniform(k1, (embd_dim, hidden), dtype, -bound1, bound1)
    b1 = jax.random.uniform(k2, (1, hidden), dtype, -bound1, bound1)
    w2 = jax.random.uniform(k3, (hidden, 1), dtype, -bound2, bound2)
    b2 = jax.random.uniform(k4, (1, 1), dtype, -bound2, bound2)
    return w1, b1, w2, b2


if __name__ == "__main__":
    key = jax.random.PRNGKey(0)
    k_x, k_p = jax.random.split(key)

    B, embd_dim = 8, 32
    x = jax.random.normal(k_x, (B, embd_dim), jnp.float32)
    w1, b1, w2, b2 = init_params(k_p, embd_dim)

    def ref_fn(xx):
        return jnp.tanh(xx @ w1 + b1) @ w2 + b2

    # 1) f32 path, batch fits in one tile.
    out = jax.block_until_ready(gate_forward(x, w1, b1, w2, b2))
    ref = ref_fn(x)
    assert out.shape == (B, 1), out.shape
    assert jnp.allclose(out, ref, atol=1e-5, rtol=1e-5), float(jnp.max(jnp.abs(out - ref)))

    # 2) f32 path, ragged batch (B not a multiple of the tile; exercises the masked
    #    last block and the >=2-step megacore split).
    B2 = 20
    x2 = jax.random.normal(k_x, (B2, embd_dim), jnp.float32)
    out2 = jax.block_until_ready(gate_forward(x2, w1, b1, w2, b2))
    ref2 = ref_fn(x2)
    assert out2.shape == (B2, 1), out2.shape
    assert jnp.allclose(out2, ref2, atol=1e-5, rtol=1e-5), float(jnp.max(jnp.abs(out2 - ref2)))

    # 3) bf16-MXU production path (in-kernel cast), looser tolerance.
    out3 = jax.block_until_ready(gate_forward(x2, w1, b1, w2, b2, mxu_dtype=jnp.bfloat16))
    assert out3.shape == (B2, 1), out3.shape
    assert jnp.allclose(out3, ref2, atol=3e-2, rtol=3e-2), float(jnp.max(jnp.abs(out3 - ref2)))

    print("KERNEL_OK")
</pallas_src>

<mosaic_0001>
module attributes {stable_mosaic.version = 11 : i64} {
  func.func @gate_kernel(%arg0: i32, %arg1: memref<8x32xf32, #tpu.memory_space<vmem>>, %arg2: memref<32x128xf32, #tpu.memory_space<vmem>>, %arg3: memref<1x128xf32, #tpu.memory_space<vmem>>, %arg4: memref<1x128xf32, #tpu.memory_space<vmem>>, %arg5: memref<1x1xf32, #tpu.memory_space<smem>>, %arg6: memref<8x1xf32, #tpu.memory_space<vmem>>) attributes {dimension_semantics = [#tpu.dimension_semantics<parallel>], iteration_bounds = array<i64: 1>, scalar_prefetch = 0 : i64, scratch_operands = 0 : i64, tpu.core_type = #tpu.core_type<tc>, window_params = [{transform_indices = @transform_0, window_bounds = array<i64: 8, 32>}, {pipeline_mode = #tpu.pipeline_mode<synchronous>, transform_indices = @transform_1, window_bounds = array<i64: 32, 128>}, {pipeline_mode = #tpu.pipeline_mode<synchronous>, transform_indices = @transform_2, window_bounds = array<i64: 1, 128>}, {pipeline_mode = #tpu.pipeline_mode<synchronous>, transform_indices = @transform_3, window_bounds = array<i64: 1, 128>}, {transform_indices = @transform_4, window_bounds = array<i64: 1, 1>}, {transform_indices = @transform_5, window_bounds = array<i64: 8, 1>}]} {
    %c0 = arith.constant 0 : index
    %c0_0 = arith.constant 0 : index
    %0 = vector.load %arg1[%c0, %c0_0] : memref<8x32xf32, #tpu.memory_space<vmem>>, vector<8x32xf32>
    %c0_1 = arith.constant 0 : index
    %c0_2 = arith.constant 0 : index
    %1 = vector.load %arg2[%c0_1, %c0_2] : memref<32x128xf32, #tpu.memory_space<vmem>>, vector<32x128xf32>
    %cst = arith.constant dense<0.000000e+00> : vector<8x128xf32>
    %2 = tpu.matmul %0, %1, %cst {dimension_numbers = #tpu.dot_dimension_numbers<[1], [0], [0], [1], [0, 0, 1, 1], [], []>} : vector<8x32xf32>, vector<32x128xf32>, vector<8x128xf32> -> vector<8x128xf32>
    %c0_3 = arith.constant 0 : index
    %c0_4 = arith.constant 0 : index
    %3 = vector.load %arg3[%c0_3, %c0_4] : memref<1x128xf32, #tpu.memory_space<vmem>>, vector<1x128xf32>
    %4 = vector.broadcast %3 : vector<1x128xf32> to vector<8x128xf32>
    %5 = arith.addf %2, %4 : vector<8x128xf32>
    %6 = math.tanh %5 : vector<8x128xf32>
    %c0_5 = arith.constant 0 : index
    %c0_6 = arith.constant 0 : index
    %7 = vector.load %arg4[%c0_5, %c0_6] : memref<1x128xf32, #tpu.memory_space<vmem>>, vector<1x128xf32>
    %8 = vector.broadcast %7 : vector<1x128xf32> to vector<8x128xf32>
    %9 = arith.mulf %6, %8 : vector<8x128xf32>
    %cst_7 = arith.constant dense<0.000000e+00> : vector<8xf32>
    %10 = vector.multi_reduction <add>, %9, %cst_7 [1] : vector<8x128xf32> to vector<8xf32>
    %11 = vector.shape_cast %10 : vector<8xf32> to vector<8x1xf32>
    %c0_8 = arith.constant 0 : index
    %c0_9 = arith.constant 0 : index
    %12 = memref.load %arg5[%c0_8, %c0_9] : memref<1x1xf32, #tpu.memory_space<smem>>
    %13 = vector.broadcast %12 : f32 to vector<8x1xf32>
    %14 = arith.addf %11, %13 : vector<8x1xf32>
    %c0_10 = arith.constant 0 : index
    %c0_11 = arith.constant 0 : index
    %15 = vector.load %arg6[%c0_10, %c0_11] : memref<8x1xf32, #tpu.memory_space<vmem>>, vector<8x1xf32>
    tpu.vector_store %arg6[%c0_10, %c0_11], %14 {strides = array<i32>} : memref<8x1xf32, #tpu.memory_space<vmem>>, vector<8x1xf32>,
    return
  }
  func.func @transform_0(%arg0: i32) -> (i32, i32) {
    %c0_i32 = arith.constant 0 : i32
    %c0_i32_0 = arith.constant 0 : i32
    return %arg0, %c0_i32 : i32, i32
  }
  func.func @transform_1(%arg0: i32) -> (i32, i32) {
    %c0_i32 = arith.constant 0 : i32
    %c0_i32_0 = arith.constant 0 : i32
    %c0_i32_1 = arith.constant 0 : i32
    return %c0_i32, %c0_i32_0 : i32, i32
  }
  func.func @transform_2(%arg0: i32) -> (i32, i32) {
    %c0_i32 = arith.constant 0 : i32
    %c0_i32_0 = arith.constant 0 : i32
    %c0_i32_1 = arith.constant 0 : i32
    return %c0_i32, %c0_i32_0 : i32, i32
  }
  func.func @transform_3(%arg0: i32) -> (i32, i32) {
    %c0_i32 = arith.constant 0 : i32
    %c0_i32_0 = arith.constant 0 : i32
    %c0_i32_1 = arith.constant 0 : i32
    return %c0_i32, %c0_i32_0 : i32, i32
  }
  func.func @transform_4(%arg0: i32) -> (i32, i32) {
    %c0_i32 = arith.constant 0 : i32
    %c0_i32_0 = arith.constant 0 : i32
    %c0_i32_1 = arith.constant 0 : i32
    return %c0_i32, %c0_i32_0 : i32, i32
  }
  func.func @transform_5(%arg0: i32) -> (i32, i32) {
    %c0_i32 = arith.constant 0 : i32
    %c0_i32_0 = arith.constant 0 : i32
    return %arg0, %c0_i32 : i32, i32
  }
}

</mosaic_0001>

<bundles_post_ra>
// kernel: tpu_custom_call.1
= control target key start
LH: loop header
LB: loop body
LE: loop exit
PB: predicated region body
PF: predicated region fallthrough
CT: control target
= control target key end

     0   :  { %11 = vsyncpa [#allocation4], 0  ;;  %s280_s0 = inlined_call_operand.hbm [shape: f32[8,32], index: 0, kind: input, shape index: {}]   ;;  %s281_s1 = inlined_call_operand.hbm [shape: f32[32,128], index: 1, kind: input, shape index: {}]   ;;  %s282_s2 = inlined_call_operand.vmem [shape: f32[1,128], index: 2, kind: input, shape index: {}]   ;;  %s283_s3 = inlined_call_operand.vmem [shape: f32[1,128], index: 3, kind: input, shape index: {}]   ;;  %s284_s4 = inlined_call_operand.<no memory space> [shape: f32[1,1], index: 4, kind: input, shape index: {}]   ;;  %s285_s5 = inlined_call_operand.vmem [shape: f32[8,1], index: 5, kind: output, shape index: {}]  }
   0x1   :  { %12 = vsyncpa [#allocation6], 0  ;;  %s226_s18 = smov [#allocation3]   ;;  %s227_s20 = smov [#allocation5]  }
   0x2   :  { %s19_s19 = sshll.u32 %s226_s18, 4  ;;  %s28_s21 = sshll.u32 %s227_s20, 4  ;;  %s20_s19 = int_to_ptr.vmem [resolvable:$true] %s19_s19  ;;  %s29_s21 = int_to_ptr.vmem [resolvable:$true] %s28_s21 }
   0x3   :  { %s190_s22 = scalar_lea.vmem %s20_s19, 128  ;;  %p195_p1 = scmp.lt.s32.totalorder %s20_s19, %s20_s19 }
   0x4   :  { %p191_p0 = scmp.ne.s32.totalorder %s20_s19, %s190_s22  ;;  %p196_p2 = scmp.lt.s32.totalorder %s190_s22, %s190_s22 }
   0x6   :  { %p197_p3 = por %p196_p2, %p195_p1 }
   0x8   :  { %p198_p4 = pnand %p197_p3, %p191_p0 }
   0xa   :  { %201 = shalt.err (!%p198_p4)
}
   0xb   :  { %22 = dma.hbm_to_vmem [thread:$0]  %s280_s0, 128, %s20_s19, [#allocation4]  }
   0xc   :  { %s210_s25 = scalar_lea.vmem %s29_s21, 512  ;;  %p215_p6 = scmp.lt.s32.totalorder %s29_s21, %s29_s21 }
   0xd   :  { %p211_p5 = scmp.ne.s32.totalorder %s29_s21, %s210_s25  ;;  %p216_p7 = scmp.lt.s32.totalorder %s210_s25, %s210_s25 }
   0xf   :  { %p217_p8 = por %p216_p7, %p215_p6 }
  0x11   :  { %p218_p9 = pnand %p217_p8, %p211_p5 }
  0x13   :  { %221 = shalt.err (!%p218_p9)
}
  0x14   :  { %s228_s26 = smov 128   ;;  %s229_s27 = smov 8  }
  0x15   :  { %34 = dma.hbm_to_vmem [thread:$0]  %s281_s1, 512, %s29_s21, [#allocation6], %s228_s26, %s228_s26, %s229_s27  }
  0x16   :  { %222 = dma.done.wait [#allocation4], 128  }
  0x17   :  { %223 = vsyncadd [#allocation4], 4294967168 }
  0x18   :  { %224 = dma.done.wait [#allocation6], 512  }
  0x19   :  { %225 = vsyncadd [#allocation6], 4294966784  ;;  %v230_v0 = vmov 0.0   ;;  %vm231_vm0 = vmmov 0   ;;  %v51_v1 = vld [vmem:[#allocation5 + $0x18] sm:$0xff]  ;;  %v50_v2 = vld [vmem:[#allocation5 + $0x10] sm:$0xff]  ;;  %v145_v13 = vstv %s284_s4 }
  0x1a   :  { %163 = vmatprep.subr.mxu0 %v230_v0  ;;  %171 = vmatprep.mubr.msk.f32.mxu0 %vm231_vm0, %v230_v0  ;;  %v49_v3 = vld [vmem:[#allocation5 + $0x8] sm:$0xff]  ;;  %v48_v4 = vld [vmem:[#allocation5] sm:$0xff]  ;;  %v47_v5 = vld [vmem:[#allocation3] sm:$0xff]  ;;  %vm59_vm1 = vcmask 261120   ;;  %vm147_vm2 = vcmask 7168  }
  0x1b   :  { %164 = vmatpush3.msra.mxu0 %v51_v1  ;;  %v155_v6 = vld [vmem:[%s282_s2] ss:$0 sm:$0xff] }
  0x1c   :  { %165 = vmatprep.subr.mxu0 %v230_v0  ;;  %v157_v10 = vld [vmem:[%s283_s3] ss:$0 sm:$0xff] }
  0x1d   :  { %166 = vmatpush3.msra.mxu0 %v50_v2 }
  0x1e   :  { %167 = vmatprep.subr.mxu0 %v230_v0 }
  0x1f   :  { %168 = vmatpush3.msra.mxu0 %v49_v3 }
  0x20   :  { %169 = vmatprep.subr.mxu0 %v230_v0 }
  0x21   :  { %170 = vmatpush3.msra.mxu0 %v48_v4 }
  0x22   :  { %172 = vmatmul.mubr.msk.f32.vlgmr.msra.gmra.mxu0 %vm59_vm1, %v47_v5 }
  0xe2   :  { %v129_v7 = vpop.f32.mrf.mxu0 }
  0xe3   :  { %v130_v8 = vadd.f32 %v155_v6, %v129_v7 }
  0xe4   :  { %v173_v9 = vpop.f32.mrf.mxu0 }
  0xe5   :  { %180 = vtanh.f32 %v130_v8 }
  0xf2   :  { %v181_v11 = vpop.eup %180 }
  0xf3   :  { %v141_v12 = vmul.f32 %v181_v11, %v157_v10 }
  0xf5   :  { %142 = vadd.xlane.f32.xlu0 %v141_v12 }
 0x17e   :  { %v143_v14 = vpop.xlane.xlu0 %142 }
 0x17f   :  { %v146_v15 = vadd.f32 %v145_v13, %v143_v14 }
 0x181   :  { %148 = vst.msk [vmem:[%s285_s5] sm:$0xff] %vm147_vm2, %v146_v15 }
 0x182   :  { %153 = vsyncpa [#allocation4], 1 }
 0x183   :  { %154 = vsyncpa [#allocation6], 1 }

</bundles_post_ra>
